<compile_context>
chip_gen: v7x
topology: tpu7x:2x2x1
jax: 0.10.0
libtpu: 0.0.40
codegen_flags: <defaults>
</compile_context>

<pallas_src>
import jax
import jax.numpy as jnp
from jax import lax
from jax.experimental import pallas as pl
from jax.experimental.pallas import tpu as pltpu

KH = KW = 3  # conv kernel size


def up_conv_kernel(x_ref, w_ref, shift_ref, o_ref):
    """One MXU matmul + folded bias/BN shift + ReLU.

    x_ref:     (TM, Kp)  K-concatenated 3-row input window (K zero-padded)
    w_ref:     (Kp, L)   folded weights: kh/kw taps, C_in contraction, 2x
                         nearest-upsample parity folding and BN scale are all
                         baked in (constant across the grid, single-buffered)
    shift_ref: (1, L)    folded conv bias + BN shift (constant across grid)
    o_ref:     (TM, L)   L = 4*W*C_out lanes, ordered (row-parity, w, col-parity, c)
    """
    acc = jnp.dot(x_ref[...], w_ref[...], preferred_element_type=jnp.float32)
    o_ref[...] = jnp.maximum(acc + shift_ref[...], 0.0).astype(o_ref.dtype)


def fold_up_conv_params(w_oihw, bias, gamma, beta, run_mean, run_var, eps, W):
    """Fold Upsample(2x)+Conv3x3(+bias)+BatchNorm(eval) into one matmul RHS.

    Output pixel (2m+a, 2n+b) of the fused op is a 2x2 conv of the 1-pixel
    zero-padded ORIGINAL image (rows m+a..m+a+1, cols n+b..n+b+1) with
    parity-folded weights.  Writing the column taps as a block-Toeplitz band
    and stacking the three row taps along K turns the whole op into a single
    matmul against the K-concatenated row window.

    Returns:
      w_folded:   (Kp, 4*W*C_out), Kp = 3*(W+2)*C_in rounded up to a multiple
                  of 128 (zero rows appended).
      shift_lane: (1, 4*W*C_out)
    Call this ONCE per parameter set — it is not part of the per-call path.
    """
    C_out, C_in = w_oihw.shape[0], w_oihw.shape[1]
    s = gamma * lax.rsqrt(run_var + eps)                  # BN scale
    shift = (bias - run_mean) * s + beta                  # (C_out,)
    # Fold BN scale into conv weights (conv is linear in w).  OIHW -> HWIO.
    w_hwio = (jnp.transpose(w_oihw, (2, 3, 1, 0)).astype(jnp.float32)
              * s[None, None, None, :])

    # fold[p][r, k]: which of the 3 conv taps land on original-resolution
    # offset r (0/1) for output parity p (same matrix for rows and columns).
    fold = jnp.array([[[1., 0., 0.], [0., 1., 1.]],       # parity 0
                      [[1., 1., 0.], [0., 0., 1.]]],      # parity 1
                     dtype=jnp.float32)
    # weff[a, b, r, t, ci, co]: effective 2x2 weights per output parity (a, b).
    weff = jnp.einsum('ark,btl,klio->abrtio', fold, fold, w_hwio)

    k_row = (W + 2) * C_in                                # K per input tap row

    def band(a, dh):
        """Band of input tap-row dh for output row-parity a, shape
        ((W+2)*C_in, W, 2, C_out) with lane order (w, col-parity b, c)."""
        r = dh - a
        cols = []
        for b in range(2):
            blk = jnp.zeros((k_row, W, C_out), jnp.float32)
            if r in (0, 1):
                for t in range(2):                        # column tap
                    diag = jnp.eye(W + 2, W, k=-(b + t), dtype=jnp.float32)
                    blk = blk + jnp.kron(diag, weff[a, b, r, t]).reshape(
                        k_row, W, C_out)
            cols.append(blk)
        return jnp.stack(cols, axis=2)                    # (k_row, W, 2, C_out)

    # Lanes ordered (a, w, b, c); K ordered (dh, padded-w, ci) to match X3.
    w_rows = []
    for dh in range(KH):
        per_a = [band(a, dh).reshape(k_row, 2 * W * C_out) for a in range(2)]
        w_rows.append(jnp.concatenate(per_a, axis=1))     # (k_row, 4*W*C_out)
    w_full = jnp.concatenate(w_rows, axis=0)              # (3*k_row, 4*W*C_out)

    k = 3 * k_row
    k_pad = 128 * ((k + 127) // 128)                      # unmasked LHS loads
    if k_pad > k:
        w_full = jnp.pad(w_full, ((0, k_pad - k), (0, 0)))

    shift_lane = jnp.tile(shift, 4 * W)[None, :]          # (1, 4*W*C_out)
    return w_full, shift_lane


def _pick_tm(m):
    for tm in (256, 128, 64, 32, 16, 8):
        if m % tm == 0:
            return tm
    return 8                                              # M is padded up below


def _const_spec(block_shape, index_map):
    """BlockSpec for an operand whose block is constant across the grid:
    single-buffer it (it is only fetched once)."""
    try:
        return pl.BlockSpec(block_shape, index_map, pipeline_mode=pl.Buffered(1))
    except Exception:                                     # older jax fallback
        return pl.BlockSpec(block_shape, index_map)


def up_conv_forward_nhwc(x_nhwc, w_folded, shift_lane, *, tm=None):
    """Fused Upsample(2x) + Conv3x3 + BN(eval) + ReLU.

    x_nhwc: (N, H, W, C_in) channels-last (lane-dense) input — the layout every
            decoder stage would keep, so the NCHW<->NHWC glue lives with the
            producer/consumer, not in this per-call path.
    Returns (N, 2H, 2W, C_out) NHWC.  `w_folded` / `shift_lane` come from
    `fold_up_conv_params` (computed once, outside the per-call path).
    """
    N, H, W, C_in = x_nhwc.shape
    k_pad, L = w_folded.shape
    C_out = L // (4 * W)
    k = 3 * (W + 2) * C_in

    # 1-pixel halo pad of the ORIGINAL image (the 2x upsample is never built;
    # it is folded into the weights), lane-dense (w, c).
    xp = jnp.pad(x_nhwc, ((0, 0), (1, 1), (1, 1), (0, 0)))
    xp = xp.reshape(N, H + 2, (W + 2) * C_in)
    # K-concatenate the 3 input tap rows per output row -> one MXU matmul,
    # and fold the batch into the matmul M dimension.
    x3 = jnp.concatenate([xp[:, 0:H], xp[:, 1:H + 1], xp[:, 2:H + 2]], axis=-1)
    x3 = x3.reshape(N * H, k)
    if k_pad > k:
        x3 = jnp.pad(x3, ((0, 0), (0, k_pad - k)))

    M = N * H
    tm = tm if tm is not None else _pick_tm(M)
    m_pad = tm * (-(-M // tm))
    if m_pad > M:                                         # zero rows, sliced off
        x3 = jnp.pad(x3, ((0, m_pad - M), (0, 0)))

    # VMEM budget from actual buffer sizes (double-buffered LHS/output,
    # single-buffered constant weights/shift), 2x slack, clamped so the same
    # setting also fits v7x's 64 MiB physical VMEM.
    vmem_bytes = 4 * (2 * tm * k_pad + k_pad * L + L + 2 * tm * L)
    vmem_limit = int(min(max(2 * vmem_bytes, 8 << 20), 48 << 20))

    out = pl.pallas_call(
        up_conv_kernel,
        out_shape=jax.ShapeDtypeStruct((m_pad, L), x_nhwc.dtype),
        grid=(m_pad // tm,),
        in_specs=[
            pl.BlockSpec((tm, k_pad), lambda i: (i, 0)),
            _const_spec((k_pad, L), lambda i: (0, 0)),
            _const_spec((1, L), lambda i: (0, 0)),
        ],
        out_specs=pl.BlockSpec((tm, L), lambda i: (i, 0)),
        compiler_params=pltpu.CompilerParams(
            dimension_semantics=("parallel",),
            vmem_limit_bytes=vmem_limit),
    )(x3, w_folded, shift_lane)

    # Lane order is (row-parity, w, col-parity, c): reshaping to NHWC is a pure
    # view -> no post-kernel parity de-interleave / transpose.  A consumer
    # wanting NCHW does a single jnp.transpose(out, (0, 3, 1, 2)).
    return out[:M].reshape(N, 2 * H, 2 * W, C_out)


def reference_forward(x_nchw, w_oihw, bias, gamma, beta, run_mean, run_var,
                      eps=1e-5):
    """Pure-JAX reference (lax.conv) of Upsample(2x)+Conv3x3+BN(eval)+ReLU."""
    x_up = jnp.repeat(jnp.repeat(x_nchw, 2, axis=2), 2, axis=3)
    conv = lax.conv_general_dilated(
        x_up, w_oihw, window_strides=(1, 1), padding=((1, 1), (1, 1)),
        dimension_numbers=('NCHW', 'OIHW', 'NCHW'))
    conv = conv + bias[None, :, None, None]
    s = gamma / jnp.sqrt(run_var + eps)
    y = (conv - run_mean[None, :, None, None]) * s[None, :, None, None] \
        + beta[None, :, None, None]
    return jnp.maximum(y, 0.0)


if __name__ == "__main__":
    key = jax.random.PRNGKey(0)
    k_x, k_w, k_b, k_g, k_be, k_m, k_v = jax.random.split(key, 7)

    N, C_in, H, W = 2, 4, 16, 16
    C_out = 8
    eps = 1e-5

    x_nchw = jax.random.normal(k_x, (N, C_in, H, W), jnp.float32)
    # Conv2d params (PyTorch OIHW layout) — deterministic synthetic init.
    w_oihw = 0.1 * jax.random.normal(k_w, (C_out, C_in, KH, KW), jnp.float32)
    bias = 0.1 * jax.random.normal(k_b, (C_out,), jnp.float32)
    # BatchNorm2d params / running stats.
    gamma = 1.0 + 0.1 * jax.random.normal(k_g, (C_out,), jnp.float32)
    beta = 0.1 * jax.random.normal(k_be, (C_out,), jnp.float32)
    run_mean = 0.1 * jax.random.normal(k_m, (C_out,), jnp.float32)
    run_var = jnp.abs(1.0 + 0.1 * jax.random.normal(k_v, (C_out,), jnp.float32))

    # Hoisted out of the per-call path: the folded weights/shift depend only on
    # conv/BN parameters and are computed once.
    w_folded, shift_lane = fold_up_conv_params(
        w_oihw, bias, gamma, beta, run_mean, run_var, eps, W)
    w_folded = jax.block_until_ready(w_folded)

    # NHWC is the decoder-internal lane-dense layout; converting the NCHW test
    # input once here stands in for the producer emitting NHWC directly.
    x_nhwc = jnp.transpose(x_nchw, (0, 2, 3, 1))

    fwd = jax.jit(up_conv_forward_nhwc, static_argnames=("tm",))
    # tm=16 -> multiple "parallel" grid steps sharing the single-buffered
    # constant weight block (2 steps at this size; also feeds both v7x TCs).
    out_nhwc = jax.block_until_ready(fwd(x_nhwc, w_folded, shift_lane, tm=16))

    ref_nchw = reference_forward(x_nchw, w_oihw, bias, gamma, beta,
                                 run_mean, run_var, eps)
    ref_nhwc = jnp.transpose(ref_nchw, (0, 2, 3, 1))

    assert out_nhwc.shape == (N, 2 * H, 2 * W, C_out), out_nhwc.shape
    err = float(jnp.max(jnp.abs(out_nhwc - ref_nhwc)))
    assert jnp.allclose(out_nhwc, ref_nhwc, atol=1e-4, rtol=1e-4), err

    print("KERNEL_OK")
</pallas_src>

<mosaic_0001>
module attributes {stable_mosaic.version = 11 : i64} {
  func.func @up_conv_kernel(%arg0: i32, %arg1: memref<16x256xf32, #tpu.memory_space<vmem>>, %arg2: memref<256x512xf32, #tpu.memory_space<vmem>>, %arg3: memref<1x512xf32, #tpu.memory_space<vmem>>, %arg4: memref<16x512xf32, #tpu.memory_space<vmem>>) attributes {dimension_semantics = [#tpu.dimension_semantics<parallel>], iteration_bounds = array<i64: 2>, scalar_prefetch = 0 : i64, scratch_operands = 0 : i64, tpu.core_type = #tpu.core_type<tc>, window_params = [{transform_indices = @transform_0, window_bounds = array<i64: 16, 256>}, {pipeline_mode = #tpu.pipeline_mode<synchronous>, transform_indices = @transform_1, window_bounds = array<i64: 256, 512>}, {pipeline_mode = #tpu.pipeline_mode<synchronous>, transform_indices = @transform_2, window_bounds = array<i64: 1, 512>}, {transform_indices = @transform_3, window_bounds = array<i64: 16, 512>}]} {
    %c0 = arith.constant 0 : index
    %c0_0 = arith.constant 0 : index
    %0 = vector.load %arg1[%c0, %c0_0] : memref<16x256xf32, #tpu.memory_space<vmem>>, vector<16x256xf32>
    %c0_1 = arith.constant 0 : index
    %c0_2 = arith.constant 0 : index
    %1 = vector.load %arg2[%c0_1, %c0_2] : memref<256x512xf32, #tpu.memory_space<vmem>>, vector<256x512xf32>
    %cst = arith.constant dense<0.000000e+00> : vector<16x512xf32>
    %2 = tpu.matmul %0, %1, %cst {dimension_numbers = #tpu.dot_dimension_numbers<[1], [0], [0], [1], [0, 0, 1, 1], [], []>} : vector<16x256xf32>, vector<256x512xf32>, vector<16x512xf32> -> vector<16x512xf32>
    %c0_3 = arith.constant 0 : index
    %c0_4 = arith.constant 0 : index
    %3 = vector.load %arg3[%c0_3, %c0_4] : memref<1x512xf32, #tpu.memory_space<vmem>>, vector<1x512xf32>
    %4 = vector.broadcast %3 : vector<1x512xf32> to vector<16x512xf32>
    %5 = arith.addf %2, %4 : vector<16x512xf32>
    %cst_5 = arith.constant 0.000000e+00 : f32
    %6 = vector.broadcast %cst_5 : f32 to vector<16x512xf32>
    %7 = arith.maximumf %5, %6 : vector<16x512xf32>
    %c0_6 = arith.constant 0 : index
    %c0_7 = arith.constant 0 : index
    %8 = vector.load %arg4[%c0_6, %c0_7] : memref<16x512xf32, #tpu.memory_space<vmem>>, vector<16x512xf32>
    tpu.vector_store %arg4[%c0_6, %c0_7], %7 {strides = array<i32>} : memref<16x512xf32, #tpu.memory_space<vmem>>, vector<16x512xf32>,
    return
  }
  func.func @transform_0(%arg0: i32) -> (i32, i32) {
    %c0_i32 = arith.constant 0 : i32
    %c0_i32_0 = arith.constant 0 : i32
    return %arg0, %c0_i32 : i32, i32
  }
  func.func @transform_1(%arg0: i32) -> (i32, i32) {
    %c0_i32 = arith.constant 0 : i32
    %c0_i32_0 = arith.constant 0 : i32
    %c0_i32_1 = arith.constant 0 : i32
    return %c0_i32, %c0_i32_0 : i32, i32
  }
  func.func @transform_2(%arg0: i32) -> (i32, i32) {
    %c0_i32 = arith.constant 0 : i32
    %c0_i32_0 = arith.constant 0 : i32
    %c0_i32_1 = arith.constant 0 : i32
    return %c0_i32, %c0_i32_0 : i32, i32
  }
  func.func @transform_3(%arg0: i32) -> (i32, i32) {
    %c0_i32 = arith.constant 0 : i32
    %c0_i32_0 = arith.constant 0 : i32
    return %arg0, %c0_i32 : i32, i32
  }
}

</mosaic_0001>

<bundles_post_ra>
// kernel: up_conv_forward_nhwc.1
= control target key start
LH: loop header
LB: loop body
LE: loop exit
PB: predicated region body
PF: predicated region fallthrough
CT: control target
= control target key end

     0   :  { %s740_s12 = smov 0   ;;  %s1157_s0 = inlined_call_operand.vmem [shape: f32[32,256], index: 0, kind: input, shape index: {}]   ;;  %s1158_s1 = inlined_call_operand.vmem [shape: f32[256,512], index: 1, kind: input, shape index: {}]   ;;  %s1159_s2 = inlined_call_operand.vmem [shape: f32[1,512], index: 2, kind: input, shape index: {}]   ;;  %s1160_s3 = inlined_call_operand.vmem [shape: f32[32,512], index: 3, kind: output, shape index: {}]  }
   0x1 LB: > { %s561_s13 = sadd.s32 4294967295, %s718_s12   ;;  %p565_p0 = scmp.ge.s32.totalorder %s718_s12, 1  ;;  %s718_s12 = sphi %s740_s12, %s13_s12  }
   0x2   : > { %p139_p1 = scmp.lt.s32.totalorder %s718_s12, 3 }
   0x4   : > { %p140_p2 = pnand %p565_p0, %p139_p1 }
   0x5   : > { %v184_v0 = vld [vmem:[%s1158_s1 + $0x8] sm:$0xff] (!%p140_p2)  ;;  %v186_v2 = vld [vmem:[%s1158_s1 + $0x18] sm:$0xff] (!%p140_p2)  ;;  %v183_v5 = vld [vmem:[%s1158_s1] sm:$0xff] (!%p140_p2)  ;;  %s566_s15 = sshll.u32 (!%p140_p2), %s561_s13, 1 }
   0x6   : > { %143 = sbr.rel (%p140_p2) target bundleno = 296 (0x128), region = 32  ;;  %v188_v1 = vld [vmem:[%s1158_s1 + $0x28] sm:$0xff] (!%p140_p2)  ;;  %v190_v4 = vld [vmem:[%s1158_s1 + $0x38] sm:$0xff] (!%p140_p2)  ;;  %v187_v6 = vld [vmem:[%s1158_s1 + $0x20] sm:$0xff] (!%p140_p2)  ;;  %p166_p3 = scmp.lt.s32.totalorder (!%p140_p2), %s566_s15, 3 }
   0x7   : > { %v576_v3 = vpack.c.bf16 (!%p140_p2), %v188_v1, %v184_v0  ;;  %v640_v7 = vpack.c.bf16 (!%p140_p2), %v190_v4, %v186_v2  ;;  %v578_v8 = vpack.c.bf16 (!%p140_p2), %v187_v6, %v183_v5  ;;  %v185_v9 = vld [vmem:[%s1158_s1 + $0x10] sm:$0xff] (!%p140_p2)  ;;  %v192_v11 = vld [vmem:[%s1158_s1 + $0x48] sm:$0xff] (!%p140_p2)  ;;  %v194_v14 = vld [vmem:[%s1158_s1 + $0x58] sm:$0xff] (!%p140_p2) }
   0x8   : > { %v189_v10 = vld [vmem:[%s1158_s1 + $0x30] sm:$0xff] (!%p140_p2)  ;;  %v196_v13 = vld [vmem:[%s1158_s1 + $0x68] sm:$0xff] (!%p140_p2)  ;;  %v198_v15 = vld [vmem:[%s1158_s1 + $0x78] sm:$0xff] (!%p140_p2) }
   0x9   : > { %577 = vmatprep.subr.bf16.mxu0 (!%p140_p2), %v576_v3  ;;  %v642_v12 = vpack.c.bf16 (!%p140_p2), %v189_v10, %v185_v9  ;;  %641 = vmatprep.subr.bf16.mxu1 (!%p140_p2), %v640_v7  ;;  %v580_v16 = vpack.c.bf16 (!%p140_p2), %v196_v13, %v192_v11  ;;  %v644_v17 = vpack.c.bf16 (!%p140_p2), %v198_v15, %v194_v14  ;;  %v191_v18 = vld [vmem:[%s1158_s1 + $0x40] sm:$0xff] (!%p140_p2)  ;;  %v193_v20 = vld [vmem:[%s1158_s1 + $0x50] sm:$0xff] (!%p140_p2)  ;;  %v200_v23 = vld [vmem:[%s1158_s1 + $0x88] sm:$0xff] (!%p140_p2) }
   0xa   : > { %579 = vmatpush1.bf16.msra.mxu0 (!%p140_p2), %v578_v8  ;;  %v195_v19 = vld [vmem:[%s1158_s1 + $0x60] sm:$0xff] (!%p140_p2)  ;;  %v197_v22 = vld [vmem:[%s1158_s1 + $0x70] sm:$0xff] (!%p140_p2)  ;;  %v204_v24 = vld [vmem:[%s1158_s1 + $0xa8] sm:$0xff] (!%p140_p2) }
   0xb   : > { %643 = vmatpush1.bf16.msra.mxu1 (!%p140_p2), %v642_v12  ;;  %v582_v21 = vpack.c.bf16 (!%p140_p2), %v195_v19, %v191_v18  ;;  %581 = vmatprep.subr.bf16.mxu0 (!%p140_p2), %v580_v16  ;;  %v646_v25 = vpack.c.bf16 (!%p140_p2), %v197_v22, %v193_v20  ;;  %v584_v26 = vpack.c.bf16 (!%p140_p2), %v204_v24, %v200_v23  ;;  %v202_v27 = vld [vmem:[%s1158_s1 + $0x98] sm:$0xff] (!%p140_p2)  ;;  %v199_v29 = vld [vmem:[%s1158_s1 + $0x80] sm:$0xff] (!%p140_p2)  ;;  %v201_v32 = vld [vmem:[%s1158_s1 + $0x90] sm:$0xff] (!%p140_p2) }
   0xc   : > { %645 = vmatprep.subr.bf16.mxu1 (!%p140_p2), %v644_v17  ;;  %v206_v28 = vld [vmem:[%s1158_s1 + $0xb8] sm:$0xff] (!%p140_p2)  ;;  %v203_v31 = vld [vmem:[%s1158_s1 + $0xa0] sm:$0xff] (!%p140_p2)  ;;  %v205_v33 = vld [vmem:[%s1158_s1 + $0xb0] sm:$0xff] (!%p140_p2) }
   0xd   : > { %v648_v30 = vpack.c.bf16 %v206_v28, %v202_v27  ;;  %v586_v34 = vpack.c.bf16 %v203_v31, %v199_v29  ;;  %v208_v35 = vld [vmem:[%s1158_s1 + $0xc8] sm:$0xff]  ;;  %v210_v37 = vld [vmem:[%s1158_s1 + $0xd8] sm:$0xff]  ;;  %v650_v38 = vpack.c.bf16 %v205_v33, %v201_v32  ;;  %v207_v41 = vld [vmem:[%s1158_s1 + $0xc0] sm:$0xff]  ;;  %s1162_s15 = smov (!%p166_p3, %s566_s15), 3 }
   0xe   : > { %583 = vmatpush1.bf16.msra.mxu0 %v582_v21  ;;  %v212_v36 = vld [vmem:[%s1158_s1 + $0xe8] sm:$0xff]  ;;  %v214_v40 = vld [vmem:[%s1158_s1 + $0xf8] sm:$0xff]  ;;  %v211_v42 = vld [vmem:[%s1158_s1 + $0xe0] sm:$0xff]  ;;  %s574_s5 = sshll.u32 %s1162_s15, 4  ;;  %s575_s29 = sshll.u32 %s1162_s15, 5 }
   0xf   : > { %647 = vmatpush1.bf16.msra.mxu1 %v646_v25  ;;  %585 = vmatprep.subr.bf16.mxu0 %v584_v26  ;;  %v588_v39 = vpack.c.bf16 %v212_v36, %v208_v35  ;;  %v652_v43 = vpack.c.bf16 %v214_v40, %v210_v37  ;;  %v209_v44 = vld [vmem:[%s1158_s1 + $0xd0] sm:$0xff]  ;;  %v216_v46 = vld [vmem:[%s1158_s1 + $0x108] sm:$0xff]  ;;  %v218_v48 = vld [vmem:[%s1158_s1 + $0x118] sm:$0xff]  ;;  %v590_v50 = vpack.c.bf16 %v211_v42, %v207_v41  ;;  %s1033_s26 = scalar_lea.vmem %s1157_s0, %s574_s5  ;;  %s177_s4 = scalar_lea.vmem %s1160_s3, %s575_s29 }
  0x10   : > { %649 = vmatprep.subr.bf16.mxu1 %v648_v30  ;;  %v213_v45 = vld [vmem:[%s1158_s1 + $0xf0] sm:$0xff]  ;;  %v220_v47 = vld [vmem:[%s1158_s1 + $0x128] sm:$0xff]  ;;  %v222_v49 = vld [vmem:[%s1158_s1 + $0x138] sm:$0xff] }
  0x11   : > { %v654_v51 = vpack.c.bf16 %v213_v45, %v209_v44  ;;  %v592_v52 = vpack.c.bf16 %v220_v47, %v216_v46  ;;  %v215_v53 = vld [vmem:[%s1158_s1 + $0x100] sm:$0xff]  ;;  %v217_v55 = vld [vmem:[%s1158_s1 + $0x110] sm:$0xff]  ;;  %v656_v56 = vpack.c.bf16 %v222_v49, %v218_v48  ;;  %v224_v58 = vld [vmem:[%s1158_s1 + $0x148] sm:$0xff] }
  0x12   : > { %587 = vmatpush1.bf16.msra.mxu0 %v586_v34  ;;  %v219_v54 = vld [vmem:[%s1158_s1 + $0x120] sm:$0xff]  ;;  %v221_v57 = vld [vmem:[%s1158_s1 + $0x130] sm:$0xff]  ;;  %v228_v59 = vld [vmem:[%s1158_s1 + $0x168] sm:$0xff] }
  0x13   : > { %651 = vmatpush1.bf16.msra.mxu1 %v650_v38  ;;  %589 = vmatprep.subr.bf16.mxu0 %v588_v39  ;;  %v226_v60 = vld [vmem:[%s1158_s1 + $0x158] sm:$0xff]  ;;  %v594_v62 = vpack.c.bf16 %v219_v54, %v215_v53  ;;  %v658_v63 = vpack.c.bf16 %v221_v57, %v217_v55  ;;  %v596_v0 = vpack.c.bf16 %v228_v59, %v224_v58  ;;  %v223_v1 = vld [vmem:[%s1158_s1 + $0x140] sm:$0xff]  ;;  %v225_v3 = vld [vmem:[%s1158_s1 + $0x150] sm:$0xff] }
  0x14   : > { %653 = vmatprep.subr.bf16.mxu1 %v652_v43  ;;  %v230_v61 = vld [vmem:[%s1158_s1 + $0x178] sm:$0xff]  ;;  %v227_v2 = vld [vmem:[%s1158_s1 + $0x160] sm:$0xff]  ;;  %v229_v5 = vld [vmem:[%s1158_s1 + $0x170] sm:$0xff] }
  0x15   : > { %v660_v4 = vpack.c.bf16 %v230_v61, %v226_v60  ;;  %v232_v6 = vld [vmem:[%s1158_s1 + $0x188] sm:$0xff]  ;;  %v234_v8 = vld [vmem:[%s1158_s1 + $0x198] sm:$0xff]  ;;  %v598_v10 = vpack.c.bf16 %v227_v2, %v223_v1  ;;  %v662_v11 = vpack.c.bf16 %v229_v5, %v225_v3  ;;  %v231_v13 = vld [vmem:[%s1158_s1 + $0x180] sm:$0xff] }
  0x16   : > { %591 = vmatpush1.bf16.msra.mxu0 %v590_v50  ;;  %v236_v7 = vld [vmem:[%s1158_s1 + $0x1a8] sm:$0xff]  ;;  %v238_v9 = vld [vmem:[%s1158_s1 + $0x1b8] sm:$0xff]  ;;  %v235_v14 = vld [vmem:[%s1158_s1 + $0x1a0] sm:$0xff] }
  0x17   : > { %655 = vmatpush1.bf16.msra.mxu1 %v654_v51  ;;  %593 = vmatprep.subr.bf16.mxu0 %v592_v52  ;;  %v600_v12 = vpack.c.bf16 %v236_v7, %v232_v6  ;;  %v233_v15 = vld [vmem:[%s1158_s1 + $0x190] sm:$0xff]  ;;  %v664_v16 = vpack.c.bf16 %v238_v9, %v234_v8  ;;  %v240_v18 = vld [vmem:[%s1158_s1 + $0x1c8] sm:$0xff]  ;;  %v242_v20 = vld [vmem:[%s1158_s1 + $0x1d8] sm:$0xff]  ;;  %v602_v22 = vpack.c.bf16 %v235_v14, %v231_v13 }
  0x18   : > { %657 = vmatprep.subr.bf16.mxu1 %v656_v56  ;;  %v237_v17 = vld [vmem:[%s1158_s1 + $0x1b0] sm:$0xff]  ;;  %v244_v19 = vld [vmem:[%s1158_s1 + $0x1e8] sm:$0xff]  ;;  %v246_v21 = vld [vmem:[%s1158_s1 + $0x1f8] sm:$0xff] }
  0x19   : > { %v666_v23 = vpack.c.bf16 %v237_v17, %v233_v15  ;;  %v604_v24 = vpack.c.bf16 %v244_v19, %v240_v18  ;;  %v239_v25 = vld [vmem:[%s1158_s1 + $0x1c0] sm:$0xff]  ;;  %v241_v27 = vld [vmem:[%s1158_s1 + $0x1d0] sm:$0xff]  ;;  %v668_v28 = vpack.c.bf16 %v246_v21, %v242_v20  ;;  %v248_v30 = vld [vmem:[%s1158_s1 + $0x208] sm:$0xff] }
  0x1a   : > { %595 = vmatpush1.bf16.msra.mxu0 %v594_v62  ;;  %v243_v26 = vld [vmem:[%s1158_s1 + $0x1e0] sm:$0xff]  ;;  %v245_v29 = vld [vmem:[%s1158_s1 + $0x1f0] sm:$0xff]  ;;  %v252_v31 = vld [vmem:[%s1158_s1 + $0x228] sm:$0xff] }
  0x1b   : > { %659 = vmatpush1.bf16.msra.mxu1 %v658_v63  ;;  %597 = vmatprep.subr.bf16.mxu0 %v596_v0  ;;  %v250_v32 = vld [vmem:[%s1158_s1 + $0x218] sm:$0xff]  ;;  %v606_v34 = vpack.c.bf16 %v243_v26, %v239_v25  ;;  %v670_v35 = vpack.c.bf16 %v245_v29, %v241_v27  ;;  %v608_v36 = vpack.c.bf16 %v252_v31, %v248_v30  ;;  %v247_v37 = vld [vmem:[%s1158_s1 + $0x200] sm:$0xff]  ;;  %v249_v39 = vld [vmem:[%s1158_s1 + $0x210] sm:$0xff] }
  0x1c   : > { %661 = vmatprep.subr.bf16.mxu1 %v660_v4  ;;  %v254_v33 = vld [vmem:[%s1158_s1 + $0x238] sm:$0xff]  ;;  %v251_v38 = vld [vmem:[%s1158_s1 + $0x220] sm:$0xff]  ;;  %v253_v41 = vld [vmem:[%s1158_s1 + $0x230] sm:$0xff] }
  0x1d   : > { %v672_v40 = vpack.c.bf16 %v254_v33, %v250_v32  ;;  %v256_v42 = vld [vmem:[%s1158_s1 + $0x248] sm:$0xff]  ;;  %v258_v44 = vld [vmem:[%s1158_s1 + $0x258] sm:$0xff]  ;;  %v610_v46 = vpack.c.bf16 %v251_v38, %v247_v37  ;;  %v674_v47 = vpack.c.bf16 %v253_v41, %v249_v39  ;;  %v255_v49 = vld [vmem:[%s1158_s1 + $0x240] sm:$0xff] }
  0x1e   : > { %599 = vmatpush1.bf16.msra.mxu0 %v598_v10  ;;  %v260_v43 = vld [vmem:[%s1158_s1 + $0x268] sm:$0xff]  ;;  %v262_v45 = vld [vmem:[%s1158_s1 + $0x278] sm:$0xff]  ;;  %v259_v50 = vld [vmem:[%s1158_s1 + $0x260] sm:$0xff] }
  0x1f   : > { %663 = vmatpush1.bf16.msra.mxu1 %v662_v11  ;;  %601 = vmatprep.subr.bf16.mxu0 %v600_v12  ;;  %v612_v48 = vpack.c.bf16 %v260_v43, %v256_v42  ;;  %v257_v51 = vld [vmem:[%s1158_s1 + $0x250] sm:$0xff]  ;;  %v676_v52 = vpack.c.bf16 %v262_v45, %v258_v44  ;;  %v264_v54 = vld [vmem:[%s1158_s1 + $0x288] sm:$0xff]  ;;  %v266_v56 = vld [vmem:[%s1158_s1 + $0x298] sm:$0xff]  ;;  %v614_v58 = vpack.c.bf16 %v259_v50, %v255_v49 }
  0x20   : > { %665 = vmatprep.subr.bf16.mxu1 %v664_v16  ;;  %v261_v53 = vld [vmem:[%s1158_s1 + $0x270] sm:$0xff]  ;;  %v268_v55 = vld [vmem:[%s1158_s1 + $0x2a8] sm:$0xff]  ;;  %v270_v57 = vld [vmem:[%s1158_s1 + $0x2b8] sm:$0xff] }
  0x21   : > { %v678_v59 = vpack.c.bf16 %v261_v53, %v257_v51  ;;  %v616_v60 = vpack.c.bf16 %v268_v55, %v264_v54  ;;  %v263_v61 = vld [vmem:[%s1158_s1 + $0x280] sm:$0xff]  ;;  %v265_v63 = vld [vmem:[%s1158_s1 + $0x290] sm:$0xff]  ;;  %v680_v0 = vpack.c.bf16 %v270_v57, %v266_v56  ;;  %v272_v2 = vld [vmem:[%s1158_s1 + $0x2c8] sm:$0xff] }
  0x22   : > { %603 = vmatpush1.bf16.msra.mxu0 %v602_v22  ;;  %v267_v62 = vld [vmem:[%s1158_s1 + $0x2a0] sm:$0xff]  ;;  %v269_v1 = vld [vmem:[%s1158_s1 + $0x2b0] sm:$0xff]  ;;  %v276_v3 = vld [vmem:[%s1158_s1 + $0x2e8] sm:$0xff] }
  0x23   : > { %667 = vmatpush1.bf16.msra.mxu1 %v666_v23  ;;  %605 = vmatprep.subr.bf16.mxu0 %v604_v24  ;;  %v274_v4 = vld [vmem:[%s1158_s1 + $0x2d8] sm:$0xff]  ;;  %v618_v6 = vpack.c.bf16 %v267_v62, %v263_v61  ;;  %v271_v7 = vld [vmem:[%s1158_s1 + $0x2c0] sm:$0xff]  ;;  %v682_v8 = vpack.c.bf16 %v269_v1, %v265_v63  ;;  %v620_v9 = vpack.c.bf16 %v276_v3, %v272_v2  ;;  %v273_v11 = vld [vmem:[%s1158_s1 + $0x2d0] sm:$0xff] }
  0x24   : > { %669 = vmatprep.subr.bf16.mxu1 %v668_v28  ;;  %v278_v5 = vld [vmem:[%s1158_s1 + $0x2f8] sm:$0xff]  ;;  %v275_v10 = vld [vmem:[%s1158_s1 + $0x2e0] sm:$0xff]  ;;  %v277_v12 = vld [vmem:[%s1158_s1 + $0x2f0] sm:$0xff] }
  0x25   : > { %v684_v13 = vpack.c.bf16 %v278_v5, %v274_v4  ;;  %v280_v14 = vld [vmem:[%s1158_s1 + $0x308] sm:$0xff]  ;;  %v282_v17 = vld [vmem:[%s1158_s1 + $0x318] sm:$0xff]  ;;  %v622_v19 = vpack.c.bf16 %v275_v10, %v271_v7  ;;  %v686_v20 = vpack.c.bf16 %v277_v12, %v273_v11  ;;  %v279_v22 = vld [vmem:[%s1158_s1 + $0x300] sm:$0xff]  ;;  %v313_v4 = vlaneseq }
  0x26   : > { %607 = vmatpush1.bf16.msra.mxu0 %v606_v34  ;;  %v284_v15 = vld [vmem:[%s1158_s1 + $0x328] sm:$0xff]  ;;  %v286_v18 = vld [vmem:[%s1158_s1 + $0x338] sm:$0xff]  ;;  %v283_v23 = vld [vmem:[%s1158_s1 + $0x320] sm:$0xff] }
  0x27   : > { %671 = vmatpush1.bf16.msra.mxu1 %v670_v35  ;;  %609 = vmatprep.subr.bf16.mxu0 %v608_v36  ;;  %v180_v16 = vld [vmem:[%s1033_s26 + $0x8] sm:$0xff]  ;;  %v624_v21 = vpack.c.bf16 %v284_v15, %v280_v14  ;;  %v281_v24 = vld [vmem:[%s1158_s1 + $0x310] sm:$0xff]  ;;  %v688_v25 = vpack.c.bf16 %v286_v18, %v282_v17  ;;  %v290_v29 = vld [vmem:[%s1158_s1 + $0x358] sm:$0xff]  ;;  %v626_v31 = vpack.c.bf16 %v283_v23, %v279_v22  ;;  %v314_v5 = vshrl.u32 %v313_v4, 7 }
  0x28   : > { %673 = vmatprep.subr.bf16.mxu1 %v672_v40  ;;  %397 = vmatprep.mubr.f32.mxu0 %v180_v16  ;;  %v285_v26 = vld [vmem:[%s1158_s1 + $0x330] sm:$0xff]  ;;  %v288_v27 = vld [vmem:[%s1158_s1 + $0x348] sm:$0xff]  ;;  %v294_v30 = vld [vmem:[%s1158_s1 + $0x378] sm:$0xff] }
  0x29   : > { %474 = vmatprep.mubr.f32.mxu1 %v180_v16  ;;  %v292_v28 = vld [vmem:[%s1158_s1 + $0x368] sm:$0xff]  ;;  %v690_v32 = vpack.c.bf16 %v285_v26, %v281_v24  ;;  %v287_v34 = vld [vmem:[%s1158_s1 + $0x340] sm:$0xff]  ;;  %v289_v36 = vld [vmem:[%s1158_s1 + $0x350] sm:$0xff]  ;;  %v692_v37 = vpack.c.bf16 %v294_v30, %v290_v29  ;;  %v327_v10 = vsub.s32 3, %v314_v5 }
  0x2a   : > { %611 = vmatpush1.bf16.msra.mxu0 %v610_v46  ;;  %v628_v33 = vpack.c.bf16 %v292_v28, %v288_v27  ;;  %v291_v35 = vld [vmem:[%s1158_s1 + $0x360] sm:$0xff]  ;;  %v293_v38 = vld [vmem:[%s1158_s1 + $0x370] sm:$0xff]  ;;  %v296_v39 = vld [vmem:[%s1158_s1 + $0x388] sm:$0xff] }
  0x2b   : > { %675 = vmatpush1.bf16.msra.mxu1 %v674_v47  ;;  %613 = vmatprep.subr.bf16.mxu0 %v612_v48  ;;  %v300_v40 = vld [vmem:[%s1158_s1 + $0x3a8] sm:$0xff]  ;;  %v298_v41 = vld [vmem:[%s1158_s1 + $0x398] sm:$0xff]  ;;  %v630_v43 = vpack.c.bf16 %v291_v35, %v287_v34  ;;  %v694_v44 = vpack.c.bf16 %v293_v38, %v289_v36  ;;  %v295_v46 = vld [vmem:[%s1158_s1 + $0x380] sm:$0xff] }
  0x2c   : > { %677 = vmatprep.subr.bf16.mxu1 %v676_v52  ;;  %v302_v42 = vld [vmem:[%s1158_s1 + $0x3b8] sm:$0xff]  ;;  %v632_v45 = vpack.c.bf16 %v300_v40, %v296_v39  ;;  %v299_v47 = vld [vmem:[%s1158_s1 + $0x3a0] sm:$0xff]  ;;  %v297_v48 = vld [vmem:[%s1158_s1 + $0x390] sm:$0xff] }
  0x2d   : > { %v696_v49 = vpack.c.bf16 %v302_v42, %v298_v41  ;;  %v301_v50 = vld [vmem:[%s1158_s1 + $0x3b0] sm:$0xff]  ;;  %v304_v51 = vld [vmem:[%s1158_s1 + $0x3c8] sm:$0xff]  ;;  %v306_v53 = vld [vmem:[%s1158_s1 + $0x3d8] sm:$0xff]  ;;  %v634_v55 = vpack.c.bf16 %v299_v47, %v295_v46 }
  0x2e   : > { %615 = vmatpush1.bf16.msra.mxu0 %v614_v58  ;;  %v308_v52 = vld [vmem:[%s1158_s1 + $0x3e8] sm:$0xff]  ;;  %v310_v54 = vld [vmem:[%s1158_s1 + $0x3f8] sm:$0xff]  ;;  %v698_v56 = vpack.c.bf16 %v301_v50, %v297_v48  ;;  %v303_v58 = vld [vmem:[%s1158_s1 + $0x3c0] sm:$0xff] }
  0x2f   : > { %679 = vmatpush1.bf16.msra.mxu1 %v678_v59  ;;  %617 = vmatprep.subr.bf16.mxu0 %v616_v60  ;;  %v636_v57 = vpack.c.bf16 %v308_v52, %v304_v51  ;;  %v307_v59 = vld [vmem:[%s1158_s1 + $0x3e0] sm:$0xff]  ;;  %v700_v60 = vpack.c.bf16 %v310_v54, %v306_v53  ;;  %v305_v61 = vld [vmem:[%s1158_s1 + $0x3d0] sm:$0xff]  ;;  %v182_v2 = vld [vmem:[%s1033_s26 + $0x18] sm:$0xff] }
  0x30   : > { %681 = vmatprep.subr.bf16.mxu1 %v680_v0  ;;  %v309_v62 = vld [vmem:[%s1158_s1 + $0x3f0] sm:$0xff]  ;;  %v638_v63 = vpack.c.bf16 %v307_v59, %v303_v58  ;;  %v179_v1 = vld [vmem:[%s1033_s26] sm:$0xff] }
  0x31   : > { %v702_v0 = vpack.c.bf16 %v309_v62, %v305_v61  ;;  %v181_v3 = vld [vmem:[%s1033_s26 + $0x10] sm:$0xff]  ;;  %v311_v7 = vld [vmem:[%s1159_s2] sm:$0xf] }
  0x32   : > { %619 = vmatpush1.bf16.msra.mxu0 %v618_v6  ;;  %v315_v6 = vsub.s32 0, %v314_v5  ;;  %v328_v14 = vrot.slane %v311_v7, %v327_v10 }
  0x33   : > { %683 = vmatpush1.bf16.msra.mxu1 %v682_v8  ;;  %621 = vmatprep.subr.bf16.mxu0 %v620_v9  ;;  %v323_v8 = vsub.s32 2, %v314_v5  ;;  %v319_v9 = vsub.s32 1, %v314_v5 }
  0x34   : > { %685 = vmatprep.subr.bf16.mxu1 %v684_v13  ;;  %v316_v11 = vrot.slane %v311_v7, %v315_v6 }
  0x35   : > { %v324_v12 = vrot.slane %v311_v7, %v323_v8  ;;  %v320_v13 = vrot.slane %v311_v7, %v319_v9 }
  0x36   : > { %623 = vmatpush1.bf16.msra.mxu0 %v622_v19 }
  0x37   : > { %687 = vmatpush1.bf16.msra.mxu1 %v686_v20  ;;  %625 = vmatprep.subr.bf16.mxu0 %v624_v21 }
  0x38   : > { %689 = vmatprep.subr.bf16.mxu1 %v688_v25 }
  0x3a   : > { %627 = vmatpush1.bf16.msra.mxu0 %v626_v31 }
  0x3b   : > { %691 = vmatpush1.bf16.msra.mxu1 %v690_v32  ;;  %629 = vmatprep.subr.bf16.mxu0 %v628_v33 }
  0x3c   : > { %693 = vmatprep.subr.bf16.mxu1 %v692_v37 }
  0x3e   : > { %631 = vmatpush1.bf16.msra.mxu0 %v630_v43 }
  0x3f   : > { %695 = vmatpush1.bf16.msra.mxu1 %v694_v44  ;;  %633 = vmatprep.subr.bf16.mxu0 %v632_v45 }
  0x40   : > { %697 = vmatprep.subr.bf16.mxu1 %v696_v49 }
  0x42   : > { %635 = vmatpush1.bf16.msra.mxu0 %v634_v55 }
  0x43   : > { %699 = vmatpush1.bf16.msra.mxu1 %v698_v56  ;;  %637 = vmatprep.subr.bf16.mxu0 %v636_v57 }
  0x44   : > { %701 = vmatprep.subr.bf16.mxu1 %v700_v60 }
  0x46   : > { %639 = vmatpush1.bf16.msra.mxu0 %v638_v63 }
  0x47   : > { %703 = vmatpush1.bf16.msra.mxu1 %v702_v0 }
  0x49   : > { %398 = vmatmul.mubr.f32.vlgmr.msra.gmra.mrb[0].mxu0 %v179_v1 }
  0x4a   : > { %475 = vmatmul.mubr.f32.vlgmr.msra.gmra.mrb[0].mxu1 %v179_v1  ;;  %403 = vmatprep.mubr.f32.mxu0 %v182_v2 }
  0x4b   : > { %480 = vmatprep.mubr.f32.mxu1 %v182_v2 }
  0x4d   : > { %404 = vmatmul.mubr.f32.gmra.mrb[2].mxu0 %v181_v3 }
  0x4e   : > { %481 = vmatmul.mubr.f32.gmra.mrb[2].mxu1 %v181_v3 }
 0x11c   : > { %v399_v15 = vpop.f32.mrb[0].mxu0 }
 0x11d   : > { %v400_v16 = vadd.f32 %v399_v15, %v316_v11  ;;  %v476_v17 = vpop.f32.mrb[0].mxu1  ;;  %v401_v18 = vpop.f32.mrb[1].mxu0 }
 0x11e   : > { %v477_v19 = vadd.f32 %v476_v17, %v324_v12  ;;  %v402_v20 = vadd.f32 %v401_v18, %v320_v13  ;;  %v478_v21 = vpop.f32.mrb[1].mxu1 }
 0x11f   : > { %v487_v22 = vmax.f32 %v400_v16, 0.0  ;;  %v479_v23 = vadd.f32 %v478_v21, %v328_v14 }
 0x120   : > { %v489_v24 = vmax.f32 %v477_v19, 0.0  ;;  %v488_v25 = vmax.f32 %v402_v20, 0.0  ;;  %v405_v26 = vpop.f32.mrb[2].mxu0 }
 0x121   : > { %495 = vst [vmem:[%s177_s4] sm:$0xff] %v487_v22  ;;  %v490_v27 = vmax.f32 %v479_v23, 0.0  ;;  %v406_v28 = vadd.f32 %v405_v26, %v316_v11  ;;  %v482_v29 = vpop.f32.mrb[2].mxu1  ;;  %v407_v30 = vpop.f32.mrb[3].mxu0 }
 0x122   : > { %497 = vst [vmem:[%s177_s4 + $0x10] sm:$0xff] %v489_v24  ;;  %496 = vst [vmem:[%s177_s4 + $0x8] sm:$0xff] %v488_v25  ;;  %v483_v31 = vadd.f32 %v482_v29, %v324_v12  ;;  %v408_v32 = vadd.f32 %v407_v30, %v320_v13  ;;  %v484_v33 = vpop.f32.mrb[3].mxu1 }
 0x123   : > { %498 = vst [vmem:[%s177_s4 + $0x18] sm:$0xff] %v490_v27  ;;  %v491_v34 = vmax.f32 %v406_v28, 0.0  ;;  %v485_v35 = vadd.f32 %v484_v33, %v328_v14 }
 0x124   : > { %v493_v36 = vmax.f32 %v483_v31, 0.0  ;;  %v492_v37 = vmax.f32 %v408_v32, 0.0 }
 0x125   : > { %499 = vst [vmem:[%s177_s4 + $0x20] sm:$0xff] %v491_v34  ;;  %v494_v38 = vmax.f32 %v485_v35, 0.0 }
 0x126   : > { %501 = vst [vmem:[%s177_s4 + $0x30] sm:$0xff] %v493_v36  ;;  %500 = vst [vmem:[%s177_s4 + $0x28] sm:$0xff] %v492_v37 }
 0x127   : > { %502 = vst [vmem:[%s177_s4 + $0x38] sm:$0xff] %v494_v38 }
 0x128 PF: > { %s13_s12 = sadd.s32 1, %s718_s12  }
 0x129   : > { %p10_p4 = scmp.ge.s32.totalorder %s13_s12, 4  }
 0x12b   :  { %12 = sbr.rel (!%p10_p4) target bundleno = 1 (0x1), region = 62 }

</bundles_post_ra>
